<compile_context>
chip_gen: v7x
topology: tpu7x:2x2x1
jax: 0.10.0
libtpu: 0.0.40
codegen_flags: <defaults>
</compile_context>

<pallas_src>
import math

import jax
import jax.numpy as jnp
from jax.experimental import pallas as pl
from jax.experimental.pallas import tpu as pltpu


def _round_up(x: int, m: int) -> int:
    return ((x + m - 1) // m) * m


def _make_kernel(softplus_bias: float, min_val: float, scale_lb: float):
    apply_clamp = scale_lb > min_val  # softplus(.)+min_val >= min_val otherwise

    def kernel(x_ref, w_loc_ref, w_scale_ref, b_loc_ref, b_scale_ref,
               loc_ref, scale_ref, acc_loc, acc_scale):
        k = pl.program_id(2)

        @pl.when(k == 0)
        def _init():
            # Seed accumulators with the broadcast bias -> no bias add in epilogue.
            acc_loc[...] = jnp.broadcast_to(
                b_loc_ref[...].astype(jnp.float32), acc_loc.shape)
            acc_scale[...] = jnp.broadcast_to(
                b_scale_ref[...].astype(jnp.float32), acc_scale.shape)

        # Operands arrive already in the MXU dtype (pre-cast in HBM by the wrapper).
        acc_loc[...] += jnp.dot(x_ref[...], w_loc_ref[...],
                                preferred_element_type=jnp.float32)
        acc_scale[...] += jnp.dot(x_ref[...], w_scale_ref[...],
                                  preferred_element_type=jnp.float32)

        @pl.when(k == pl.num_programs(2) - 1)
        def _finalize():
            scale = jax.nn.softplus(acc_scale[...] + softplus_bias) + min_val
            if apply_clamp:
                scale = jnp.maximum(scale, scale_lb)
            loc_ref[...] = acc_loc[...].astype(loc_ref.dtype)
            scale_ref[...] = scale.astype(scale_ref.dtype)

    return kernel


def normal_param_wrapper(x, weight, bias, *, scale_lb: float = 1e-4, mxu_dtype=None):
    """x: (B, F_in); weight: (F_in, F_out); bias: (F_out,).

    Returns (loc, scale), each (B, F_out // 2), matching
    NormalParamWrapper(nn.Linear(F_in, F_out)) with scale_mapping="biased_softplus_1.0".

    mxu_dtype: set to jnp.bfloat16 for the high-throughput MXU path (recommended on
    v5e); operands are cast once in HBM, accumulation stays f32.
    """
    B, F_in = x.shape
    F_in_w, F_out = weight.shape
    assert F_in == F_in_w
    assert F_out % 2 == 0
    half = F_out // 2

    # biased_softplus_1.0 -> bias=1.0, min_val=0.1 (tensordict default)
    bsp_min_val = 0.1
    softplus_bias = math.log(math.expm1(1.0 - bsp_min_val))

    out_dtype = x.dtype
    op_dtype = jnp.dtype(mxu_dtype) if mxu_dtype is not None else jnp.dtype(x.dtype)
    in_size = op_dtype.itemsize
    out_size = jnp.dtype(out_dtype).itemsize

    # ---- tile heuristic: big tiles, (8,128)-aligned ----
    # N (output half).
    half_p = _round_up(half, 128)
    if half_p <= 1024:
        tn = half_p
    else:
        tn = next(t for t in (1024, 512, 256, 128) if half_p % t == 0)
    # K (reduction = F_in): full when small -> single K step, no acc re-sweeps.
    if F_in <= 1024:
        F_in_p = _round_up(F_in, 8)
        tk = F_in_p
    else:
        F_in_p = _round_up(F_in, 128)
        tk = next(t for t in (1024, 512, 256, 128) if F_in_p % t == 0)
    # M (batch): larger cap cuts weight re-streaming; bf16 operands allow 1024.
    tm_cap = 1024 if in_size <= 2 else 512
    B_p = _round_up(B, 8)
    if B_p <= tm_cap:
        tm = B_p
    else:
        B_p = _round_up(B_p, 256)
        tm = next(t for t in (tm_cap, 512, 256) if B_p % t == 0)

    # v7x megacore: ensure at least one "parallel" axis has >= 2 blocks when possible.
    if (B_p // tm == 1) and (half_p // tn == 1):
        if tn % 256 == 0:
            tn //= 2
        elif tm % 16 == 0:
            tm //= 2
    half_blocks = half_p // tn
    m_blocks = B_p // tm
    k_blocks = F_in_p // tk

    # ---- pad operands (one-time XLA ops; identity for aligned shapes) ----
    needs_pad = (B_p != B) or (F_in_p != F_in) or (half_p != half)
    if needs_pad:
        x_p = jnp.zeros((B_p, F_in_p), x.dtype).at[:B, :F_in].set(x)
        w_p = (jnp.zeros((F_in_p, 2 * half_p), weight.dtype)
               .at[:F_in, :half].set(weight[:, :half])
               .at[:F_in, half_p:half_p + half].set(weight[:, half:]))
        b_p = (jnp.zeros((1, 2 * half_p), jnp.float32)
               .at[0, :half].set(bias[:half].astype(jnp.float32))
               .at[0, half_p:half_p + half].set(bias[half:].astype(jnp.float32)))
    else:
        x_p = x
        w_p = weight
        b_p = bias.astype(jnp.float32).reshape(1, F_out)

    # Pre-cast MXU operands in HBM (halves weight DMA + VMEM bytes for bf16;
    # avoids per-k VPU casts and v5e multi-pass f32 MXU emulation).
    if x_p.dtype != op_dtype:
        x_p = x_p.astype(op_dtype)
    if w_p.dtype != op_dtype:
        w_p = w_p.astype(op_dtype)

    grid = (m_blocks, half_blocks, k_blocks)

    kernel = _make_kernel(softplus_bias, bsp_min_val, float(scale_lb))

    # VMEM footprint estimate (2-deep pipelining on every stream) -> explicit limit.
    est = (2 * tm * tk * in_size            # activations, double-buffered
           + 2 * 2 * tk * tn * in_size      # two weight streams
           + 2 * 2 * 8 * tn * 4             # bias tiles (sublane-padded)
           + 2 * 2 * tm * tn * out_size     # two outputs
           + 2 * tm * tn * 4)               # f32 accumulators
    vmem_limit = int(min(max(2 * est, 32 * 2**20), 48 * 2**20))

    cost = pl.CostEstimate(
        flops=2 * B_p * F_in_p * (2 * half_p),
        transcendentals=2 * B_p * half_p,
        bytes_accessed=(half_blocks * B_p * F_in_p * in_size       # x re-read per j
                        + m_blocks * F_in_p * 2 * half_p * in_size  # W re-read per i
                        + m_blocks * 2 * half_p * 4                 # bias
                        + 2 * B_p * half_p * out_size),             # outputs
    )

    loc_p, scale_p = pl.pallas_call(
        kernel,
        out_shape=(
            jax.ShapeDtypeStruct((B_p, half_p), out_dtype),
            jax.ShapeDtypeStruct((B_p, half_p), out_dtype),
        ),
        grid_spec=pltpu.PrefetchScalarGridSpec(
            num_scalar_prefetch=0,
            grid=grid,
            in_specs=[
                # activations
                pl.BlockSpec((tm, tk), lambda i, j, k: (i, k)),
                # weight: loc half and scale half streamed as separate lane-dense tiles
                pl.BlockSpec((tk, tn), lambda i, j, k: (k, j)),
                pl.BlockSpec((tk, tn), lambda i, j, k: (k, half_blocks + j)),
                # bias halves (consumed only at k==0)
                pl.BlockSpec((1, tn), lambda i, j, k: (0, j)),
                pl.BlockSpec((1, tn), lambda i, j, k: (0, half_blocks + j)),
            ],
            out_specs=[
                pl.BlockSpec((tm, tn), lambda i, j, k: (i, j)),
                pl.BlockSpec((tm, tn), lambda i, j, k: (i, j)),
            ],
            scratch_shapes=[
                pltpu.VMEM((tm, tn), jnp.float32),  # loc accumulator
                pltpu.VMEM((tm, tn), jnp.float32),  # scale accumulator
            ],
        ),
        compiler_params=pltpu.CompilerParams(
            dimension_semantics=("parallel", "parallel", "arbitrary"),
            vmem_limit_bytes=vmem_limit,
        ),
        cost_estimate=cost,
    )(x_p, w_p, w_p, b_p, b_p)

    if needs_pad:
        return loc_p[:B, :half], scale_p[:B, :half]
    return loc_p, scale_p


def _reference(x, weight, bias, scale_lb=1e-4):
    y = x @ weight + bias
    half = y.shape[-1] // 2
    loc, pre = y[:, :half], y[:, half:]
    b = math.log(math.expm1(1.0 - 0.1))
    scale = jax.nn.softplus(pre + b) + 0.1
    scale = jnp.maximum(scale, scale_lb)
    return loc, scale


if __name__ == "__main__":
    # Small shapes: batch=8, F_in=32, operator output F_out=256 -> loc/scale dim 128.
    B, F_IN, F_OUT = 8, 32, 256

    key = jax.random.PRNGKey(0)
    kx, kw, kb = jax.random.split(key, 3)

    x = jax.random.normal(kx, (B, F_IN), dtype=jnp.float32)
    lim = 1.0 / math.sqrt(F_IN)  # nn.Linear-like init
    weight = jax.random.uniform(kw, (F_IN, F_OUT), jnp.float32, -lim, lim)
    bias = jax.random.uniform(kb, (F_OUT,), jnp.float32, -lim, lim)

    loc_ref, scale_ref = _reference(x, weight, bias)

    # f32 MXU path (bit-close to the reference).
    loc, scale = normal_param_wrapper(x, weight, bias)
    loc, scale = jax.block_until_ready((loc, scale))
    assert loc.shape == (B, F_OUT // 2) and scale.shape == (B, F_OUT // 2)
    assert bool(jnp.all(scale > 0))
    assert bool(jnp.allclose(loc, loc_ref, atol=1e-5, rtol=1e-5))
    assert bool(jnp.allclose(scale, scale_ref, atol=1e-5, rtol=1e-5))

    # bf16 MXU operands (pre-cast in HBM) / f32 accumulation (v5e/v6e/v7x fast path).
    loc_bf, scale_bf = normal_param_wrapper(x, weight, bias, mxu_dtype=jnp.bfloat16)
    loc_bf, scale_bf = jax.block_until_ready((loc_bf, scale_bf))
    assert bool(jnp.all(scale_bf > 0))
    assert bool(jnp.allclose(loc_bf, loc_ref, atol=5e-2, rtol=5e-2))
    assert bool(jnp.allclose(scale_bf, scale_ref, atol=5e-2, rtol=5e-2))

    # Unaligned shapes exercise the padding path (B=5, F_in=20, half=96).
    B2, F_IN2, F_OUT2 = 5, 20, 192
    x2 = jax.random.normal(kx, (B2, F_IN2), dtype=jnp.float32)
    w2 = jax.random.uniform(kw, (F_IN2, F_OUT2), jnp.float32, -lim, lim)
    b2 = jax.random.uniform(kb, (F_OUT2,), jnp.float32, -lim, lim)
    loc2, scale2 = jax.block_until_ready(normal_param_wrapper(x2, w2, b2))
    loc2_ref, scale2_ref = _reference(x2, w2, b2)
    assert loc2.shape == (B2, F_OUT2 // 2) and scale2.shape == (B2, F_OUT2 // 2)
    assert bool(jnp.allclose(loc2, loc2_ref, atol=1e-5, rtol=1e-5))
    assert bool(jnp.allclose(scale2, scale2_ref, atol=1e-5, rtol=1e-5))

    # Multi-K accumulation + megacore N-split path (F_in=2048 -> 2 K steps, tn split).
    B3, F_IN3, F_OUT3 = 16, 2048, 512
    lim3 = 1.0 / math.sqrt(F_IN3)
    x3 = jax.random.normal(kx, (B3, F_IN3), dtype=jnp.float32)
    w3 = jax.random.uniform(kw, (F_IN3, F_OUT3), jnp.float32, -lim3, lim3)
    b3 = jax.random.uniform(kb, (F_OUT3,), jnp.float32, -lim3, lim3)
    loc3, scale3 = jax.block_until_ready(normal_param_wrapper(x3, w3, b3))
    loc3_ref, scale3_ref = _reference(x3, w3, b3)
    assert bool(jnp.allclose(loc3, loc3_ref, atol=1e-4, rtol=1e-4))
    assert bool(jnp.allclose(scale3, scale3_ref, atol=1e-4, rtol=1e-4))

    print("KERNEL_OK")
</pallas_src>

<mosaic_0001>
module attributes {stable_mosaic.version = 11 : i64} {
  func.func @kernel(%arg0: i32, %arg1: i32, %arg2: i32, %arg3: memref<8x32xf32, #tpu.memory_space<vmem>>, %arg4: memref<32x128xf32, #tpu.memory_space<vmem>>, %arg5: memref<32x128xf32, #tpu.memory_space<vmem>>, %arg6: memref<1x128xf32, #tpu.memory_space<vmem>>, %arg7: memref<1x128xf32, #tpu.memory_space<vmem>>, %arg8: memref<8x128xf32, #tpu.memory_space<vmem>>, %arg9: memref<8x128xf32, #tpu.memory_space<vmem>>, %arg10: memref<8x128xf32, #tpu.memory_space<vmem>>, %arg11: memref<8x128xf32, #tpu.memory_space<vmem>>) attributes {dimension_semantics = [#tpu.dimension_semantics<parallel>, #tpu.dimension_semantics<parallel>, #tpu.dimension_semantics<arbitrary>], iteration_bounds = array<i64: 1, 1, 1>, scalar_prefetch = 0 : i64, scratch_operands = 2 : i64, tpu.core_type = #tpu.core_type<tc>, window_params = [{transform_indices = @transform_0, window_bounds = array<i64: 8, 32>}, {transform_indices = @transform_1, window_bounds = array<i64: 32, 128>}, {transform_indices = @transform_2, window_bounds = array<i64: 32, 128>}, {transform_indices = @transform_3, window_bounds = array<i64: 1, 128>}, {transform_indices = @transform_4, window_bounds = array<i64: 1, 128>}, {transform_indices = @transform_5, window_bounds = array<i64: 8, 128>}, {transform_indices = @transform_6, window_bounds = array<i64: 8, 128>}]} {
    %c0_i32 = arith.constant 0 : i32
    %0 = arith.cmpi eq, %arg2, %c0_i32 : i32
    %1 = arith.extui %0 : i1 to i32
    %c0_i32_0 = arith.constant 0 : i32
    %2 = arith.cmpi ne, %1, %c0_i32_0 : i32
    scf.if %2 {
      %c0_19 = arith.constant 0 : index
      %c0_20 = arith.constant 0 : index
      %18 = vector.load %arg6[%c0_19, %c0_20] : memref<1x128xf32, #tpu.memory_space<vmem>>, vector<1x128xf32>
      %19 = vector.shape_cast %18 : vector<1x128xf32> to vector<1x128xf32>
      %20 = vector.broadcast %19 : vector<1x128xf32> to vector<8x128xf32>
      %c0_21 = arith.constant 0 : index
      %c0_22 = arith.constant 0 : index
      %21 = vector.load %arg10[%c0_21, %c0_22] : memref<8x128xf32, #tpu.memory_space<vmem>>, vector<8x128xf32>
      tpu.vector_store %arg10[%c0_21, %c0_22], %20 {strides = array<i32>} : memref<8x128xf32, #tpu.memory_space<vmem>>, vector<8x128xf32>,
      %c0_23 = arith.constant 0 : index
      %c0_24 = arith.constant 0 : index
      %22 = vector.load %arg7[%c0_23, %c0_24] : memref<1x128xf32, #tpu.memory_space<vmem>>, vector<1x128xf32>
      %23 = vector.shape_cast %22 : vector<1x128xf32> to vector<1x128xf32>
      %24 = vector.broadcast %23 : vector<1x128xf32> to vector<8x128xf32>
      %c0_25 = arith.constant 0 : index
      %c0_26 = arith.constant 0 : index
      %25 = vector.load %arg11[%c0_25, %c0_26] : memref<8x128xf32, #tpu.memory_space<vmem>>, vector<8x128xf32>
      tpu.vector_store %arg11[%c0_25, %c0_26], %24 {strides = array<i32>} : memref<8x128xf32, #tpu.memory_space<vmem>>, vector<8x128xf32>,
    } else {
    }
    %c0 = arith.constant 0 : index
    %c0_1 = arith.constant 0 : index
    %3 = vector.load %arg10[%c0, %c0_1] : memref<8x128xf32, #tpu.memory_space<vmem>>, vector<8x128xf32>
    %c0_2 = arith.constant 0 : index
    %c0_3 = arith.constant 0 : index
    %4 = vector.load %arg3[%c0_2, %c0_3] : memref<8x32xf32, #tpu.memory_space<vmem>>, vector<8x32xf32>
    %c0_4 = arith.constant 0 : index
    %c0_5 = arith.constant 0 : index
    %5 = vector.load %arg4[%c0_4, %c0_5] : memref<32x128xf32, #tpu.memory_space<vmem>>, vector<32x128xf32>
    %cst = arith.constant dense<0.000000e+00> : vector<8x128xf32>
    %6 = tpu.matmul %4, %5, %cst {dimension_numbers = #tpu.dot_dimension_numbers<[1], [0], [0], [1], [0, 0, 1, 1], [], []>} : vector<8x32xf32>, vector<32x128xf32>, vector<8x128xf32> -> vector<8x128xf32>
    %7 = arith.addf %3, %6 : vector<8x128xf32>
    %c0_6 = arith.constant 0 : index
    %c0_7 = arith.constant 0 : index
    %8 = vector.load %arg10[%c0_6, %c0_7] : memref<8x128xf32, #tpu.memory_space<vmem>>, vector<8x128xf32>
    tpu.vector_store %arg10[%c0_6, %c0_7], %7 {strides = array<i32>} : memref<8x128xf32, #tpu.memory_space<vmem>>, vector<8x128xf32>,
    %c0_8 = arith.constant 0 : index
    %c0_9 = arith.constant 0 : index
    %9 = vector.load %arg11[%c0_8, %c0_9] : memref<8x128xf32, #tpu.memory_space<vmem>>, vector<8x128xf32>
    %c0_10 = arith.constant 0 : index
    %c0_11 = arith.constant 0 : index
    %10 = vector.load %arg3[%c0_10, %c0_11] : memref<8x32xf32, #tpu.memory_space<vmem>>, vector<8x32xf32>
    %c0_12 = arith.constant 0 : index
    %c0_13 = arith.constant 0 : index
    %11 = vector.load %arg5[%c0_12, %c0_13] : memref<32x128xf32, #tpu.memory_space<vmem>>, vector<32x128xf32>
    %cst_14 = arith.constant dense<0.000000e+00> : vector<8x128xf32>
    %12 = tpu.matmul %10, %11, %cst_14 {dimension_numbers = #tpu.dot_dimension_numbers<[1], [0], [0], [1], [0, 0, 1, 1], [], []>} : vector<8x32xf32>, vector<32x128xf32>, vector<8x128xf32> -> vector<8x128xf32>
    %13 = arith.addf %9, %12 : vector<8x128xf32>
    %c0_15 = arith.constant 0 : index
    %c0_16 = arith.constant 0 : index
    %14 = vector.load %arg11[%c0_15, %c0_16] : memref<8x128xf32, #tpu.memory_space<vmem>>, vector<8x128xf32>
    tpu.vector_store %arg11[%c0_15, %c0_16], %13 {strides = array<i32>} : memref<8x128xf32, #tpu.memory_space<vmem>>, vector<8x128xf32>,
    %c0_i32_17 = arith.constant 0 : i32
    %15 = arith.cmpi eq, %arg2, %c0_i32_17 : i32
    %16 = arith.extui %15 : i1 to i32
    %c0_i32_18 = arith.constant 0 : i32
    %17 = arith.cmpi ne, %16, %c0_i32_18 : i32
    scf.if %17 {
      %c0_19 = arith.constant 0 : index
      %c0_20 = arith.constant 0 : index
      %18 = vector.load %arg11[%c0_19, %c0_20] : memref<8x128xf32, #tpu.memory_space<vmem>>, vector<8x128xf32>
      %cst_21 = arith.constant 0.37816456 : f32
      %19 = vector.broadcast %cst_21 : f32 to vector<8x128xf32>
      %20 = arith.addf %18, %19 : vector<8x128xf32>
      %cst_22 = arith.constant 0.000000e+00 : f32
      %21 = vector.broadcast %cst_22 : f32 to vector<8x128xf32>
      %22 = arith.maximumf %20, %21 : vector<8x128xf32>
      %23 = vector.broadcast %cst_22 : f32 to vector<8x128xf32>
      %24 = arith.subf %20, %23 : vector<8x128xf32>
      %25 = arith.cmpf one, %24, %24 : vector<8x128xf32>
      %26 = vector.broadcast %cst_22 : f32 to vector<8x128xf32>
      %27 = arith.addf %20, %26 : vector<8x128xf32>
      %28 = math.absf %24 : vector<8x128xf32>
      %cst_23 = arith.constant 0.000000e+00 : f32
      %29 = vector.broadcast %cst_23 : f32 to vector<8x128xf32>
      %30 = arith.subf %29, %28 : vector<8x128xf32>
      %31 = math.exp %30 : vector<8x128xf32>
      %32 = math.log1p %31 : vector<8x128xf32>
      %33 = arith.addf %22, %32 : vector<8x128xf32>
      %34 = arith.select %25, %27, %33 : vector<8x128xi1>, vector<8x128xf32>
      %cst_24 = arith.constant 1.000000e-01 : f32
      %35 = vector.broadcast %cst_24 : f32 to vector<8x128xf32>
      %36 = arith.addf %34, %35 : vector<8x128xf32>
      %c0_25 = arith.constant 0 : index
      %c0_26 = arith.constant 0 : index
      %37 = vector.load %arg10[%c0_25, %c0_26] : memref<8x128xf32, #tpu.memory_space<vmem>>, vector<8x128xf32>
      %c0_27 = arith.constant 0 : index
      %c0_28 = arith.constant 0 : index
      %38 = vector.load %arg8[%c0_27, %c0_28] : memref<8x128xf32, #tpu.memory_space<vmem>>, vector<8x128xf32>
      tpu.vector_store %arg8[%c0_27, %c0_28], %37 {strides = array<i32>} : memref<8x128xf32, #tpu.memory_space<vmem>>, vector<8x128xf32>,
      %c0_29 = arith.constant 0 : index
      %c0_30 = arith.constant 0 : index
      %39 = vector.load %arg9[%c0_29, %c0_30] : memref<8x128xf32, #tpu.memory_space<vmem>>, vector<8x128xf32>
      tpu.vector_store %arg9[%c0_29, %c0_30], %36 {strides = array<i32>} : memref<8x128xf32, #tpu.memory_space<vmem>>, vector<8x128xf32>,
    } else {
    }
    return
  }
  func.func @transform_0(%arg0: i32, %arg1: i32, %arg2: i32) -> (i32, i32) {
    %c0_i32 = arith.constant 0 : i32
    return %arg0, %arg2 : i32, i32
  }
  func.func @transform_1(%arg0: i32, %arg1: i32, %arg2: i32) -> (i32, i32) {
    %c0_i32 = arith.constant 0 : i32
    return %arg2, %arg1 : i32, i32
  }
  func.func @transform_2(%arg0: i32, %arg1: i32, %arg2: i32) -> (i32, i32) {
    %c1_i32 = arith.constant 1 : i32
    %0 = arith.addi %c1_i32, %arg1 : i32
    %c0_i32 = arith.constant 0 : i32
    return %arg2, %0 : i32, i32
  }
  func.func @transform_3(%arg0: i32, %arg1: i32, %arg2: i32) -> (i32, i32) {
    %c0_i32 = arith.constant 0 : i32
    %c0_i32_0 = arith.constant 0 : i32
    return %c0_i32, %arg1 : i32, i32
  }
  func.func @transform_4(%arg0: i32, %arg1: i32, %arg2: i32) -> (i32, i32) {
    %c1_i32 = arith.constant 1 : i32
    %0 = arith.addi %c1_i32, %arg1 : i32
    %c0_i32 = arith.constant 0 : i32
    %c0_i32_0 = arith.constant 0 : i32
    return %c0_i32, %0 : i32, i32
  }
  func.func @transform_5(%arg0: i32, %arg1: i32, %arg2: i32) -> (i32, i32) {
    %c0_i32 = arith.constant 0 : i32
    return %arg0, %arg1 : i32, i32
  }
  func.func @transform_6(%arg0: i32, %arg1: i32, %arg2: i32) -> (i32, i32) {
    %c0_i32 = arith.constant 0 : i32
    return %arg0, %arg1 : i32, i32
  }
}

</mosaic_0001>

<bundles_post_ra>
// kernel: tpu_custom_call.1
= control target key start
LH: loop header
LB: loop body
LE: loop exit
PB: predicated region body
PF: predicated region fallthrough
CT: control target
= control target key end

     0   :  { %12 = vsyncpa [#allocation5], 0  ;;  %s637_s0 = inlined_call_operand.hbm [shape: f32[8,32], index: 0, kind: input, shape index: {}]   ;;  %s638_s1 = inlined_call_operand.hbm [shape: f32[32,256], index: 1, kind: input, shape index: {}]   ;;  %s639_s2 = inlined_call_operand.hbm [shape: f32[32,256], index: 2, kind: input, shape index: {}]   ;;  %s640_s3 = inlined_call_operand.vmem [shape: f32[1,256], index: 3, kind: input, shape index: {}]   ;;  %s641_s4 = inlined_call_operand.vmem [shape: f32[1,256], index: 4, kind: input, shape index: {}]   ;;  %s642_s5 = inlined_call_operand.hbm [shape: f32[8,128], index: 5, kind: output, shape index: {0}]   ;;  %s643_s6 = inlined_call_operand.hbm [shape: f32[8,128], index: 6, kind: output, shape index: {1}]  }
   0x1   :  { %13 = vsyncpa [#allocation8], 0 }
   0x2   :  { %14 = vsyncpa [#allocation6], 0 }
   0x3   :  { %15 = vsyncpa [#allocation12], 0  ;;  %s510_s21 = smov [#allocation7]   ;;  %s389_s25 = scalar_lea.hbm %s638_s1, 512 }
   0x4   :  { %s31_s22 = sshll.u32 %s510_s21, 4  ;;  %p390_p0 = scmp.ne.s32.totalorder %s638_s1, %s389_s25  ;;  %s32_s22 = int_to_ptr.vmem [resolvable:$true] %s31_s22 }
   0x5   :  { %s391_s30 = scalar_lea.hbm %s638_s1, 1024  ;;  %p393_p2 = scmp.lt.u32.totalorder %s389_s25, %s638_s1 }
   0x6   :  { %p392_p1 = scmp.lt.u32.totalorder %s391_s30, %s389_s25 }
   0x8   :  { %p394_p3 = por %p393_p2, %p392_p1 }
   0xa   :  { %p395_p4 = pnand %p394_p3, %p390_p0 }
   0xc   :  { %398 = shalt.err (!%p395_p4)
}
   0xd   :  { %s399_s9 = scalar_lea.vmem %s32_s22, 512  ;;  %p404_p6 = scmp.lt.s32.totalorder %s32_s22, %s32_s22 }
   0xe   :  { %p400_p5 = scmp.ne.s32.totalorder %s32_s22, %s399_s9  ;;  %p405_p7 = scmp.lt.s32.totalorder %s399_s9, %s399_s9 }
  0x10   :  { %p406_p8 = por %p405_p7, %p404_p6 }
  0x12   :  { %p407_p9 = pnand %p406_p8, %p400_p5 }
  0x14   :  { %410 = shalt.err (!%p407_p9)
}
  0x15   :  { %s511_s10 = smov 256   ;;  %s512_s11 = smov 128  }
  0x16   :  { %s513_s12 = smov 8   ;;  %s577_s17 = scalar_lea.hbm %s639_s2, 128 }
  0x17   :  { %37 = dma.hbm_to_vmem [thread:$0]  %s638_s1, 512, %s32_s22, [#allocation8], %s511_s10, %s512_s11, %s513_s12  }
  0x18   :  { %s514_s18 = smov [#allocation4]   ;;  %s515_s20 = smov [#allocation9]  }
  0x19   :  { %s22_s19 = sshll.u32 %s514_s18, 4  ;;  %s46_s21 = sshll.u32 %s515_s20, 4  ;;  %s23_s19 = int_to_ptr.vmem [resolvable:$true] %s22_s19  ;;  %s47_s21 = int_to_ptr.vmem [resolvable:$true] %s46_s21 }
  0x1a   :  { %s411_s25 = scalar_lea.hbm %s637_s0, 128 }
  0x1b   :  { %p412_p10 = scmp.ne.s32.totalorder %s637_s0, %s411_s25  ;;  %p415_p11 = scmp.lt.u32.totalorder %s411_s25, %s637_s0 }
  0x1d   :  { %p417_p12 = pnand %p415_p11, %p412_p10 }
  0x1f   :  { %420 = shalt.err (!%p417_p12)
}
  0x20   :  { %s421_s22 = scalar_lea.vmem %s23_s19, 128  ;;  %p426_p0 = scmp.lt.s32.totalorder %s23_s19, %s23_s19 }
  0x21   :  { %p422_p13 = scmp.ne.s32.totalorder %s23_s19, %s421_s22  ;;  %p427_p1 = scmp.lt.s32.totalorder %s421_s22, %s421_s22 }
  0x23   :  { %p428_p2 = por %p427_p1, %p426_p0 }
  0x25   :  { %p429_p3 = pnand %p428_p2, %p422_p13 }
  0x27   :  { %432 = shalt.err (!%p429_p3)
}
  0x28   :  { %25 = dma.hbm_to_vmem [thread:$0]  %s637_s0, 128, %s23_s19, [#allocation5]  }
  0x29   :  { %s457_s9 = scalar_lea.hbm %s639_s2, 640  ;;  %s435_s15 = scalar_lea.hbm %s639_s2, 1024 }
  0x2a   :  { %p434_p4 = scmp.ne.s32.totalorder %s577_s17, %s457_s9  ;;  %p436_p5 = scmp.lt.u32.totalorder %s577_s17, %s639_s2 }
  0x2b   :  { %p437_p6 = scmp.lt.u32.totalorder %s435_s15, %s457_s9  ;;  %p439_p8 = scmp.lt.u32.totalorder %s457_s9, %s577_s17 }
  0x2d   :  { %p438_p7 = por %p437_p6, %p436_p5 }
  0x2f   :  { %p440_p9 = por %p439_p8, %p438_p7 }
  0x31   :  { %p441_p10 = pnand %p440_p9, %p434_p4 }
  0x33   :  { %444 = shalt.err (!%p441_p10)
}
  0x34   :  { %s445_s0 = scalar_lea.vmem %s47_s21, 512  ;;  %p450_p12 = scmp.lt.s32.totalorder %s47_s21, %s47_s21 }
  0x35   :  { %p446_p11 = scmp.ne.s32.totalorder %s47_s21, %s445_s0  ;;  %p451_p13 = scmp.lt.s32.totalorder %s445_s0, %s445_s0 }
  0x37   :  { %p452_p0 = por %p451_p13, %p450_p12 }
  0x39   :  { %p453_p1 = pnand %p452_p0, %p446_p11 }
  0x3b   :  { %456 = shalt.err (!%p453_p1)
}
  0x3c   :  { %52 = dma.hbm_to_vmem [thread:$0]  %s577_s17, 512, %s47_s21, [#allocation8], %s511_s10, %s512_s11, %s513_s12  }
  0x3d   :  { %502 = dma.done.wait [#allocation5], 128  }
  0x3e   :  { %503 = vsyncadd [#allocation5], 4294967168 }
  0x3f   :  { %504 = dma.done.wait [#allocation8], 1024  }
  0x40   :  { %505 = vsyncadd [#allocation8], 4294966272  ;;  %v516_v0 = vmov 0.0|0.0   ;;  %vm517_vm0 = vmmov 0   ;;  %v518_v1 = vmov 0.0   ;;  %v185_v2 = vld [vmem:[#allocation9] sm:$0xff] }
  0x41   :  { %368 = vmatprep.subr.bf16.mxu1 %v516_v0  ;;  %359 = vmatprep.mubr.msk.f32.mxu1 %vm517_vm0, %v518_v1  ;;  %v186_v3 = vld [vmem:[#allocation9 + $0x8] sm:$0xff]  ;;  %v187_v4 = vld [vmem:[#allocation9 + $0x10] sm:$0xff]  ;;  %v188_v6 = vld [vmem:[#allocation9 + $0x18] sm:$0xff]  ;;  %vm107_vm1 = vcmask 261120   ;;  %s519_s17 = smov [#allocation10]  }
  0x42   :  { %362 = vmatprep.subr.bf16.mxu0 %v516_v0  ;;  %348 = vmatprep.mubr.msk.f32.mxu0 %vm517_vm0, %v518_v1  ;;  %v369_v5 = vpack.c.bf16 %v186_v3, %v185_v2  ;;  %v103_v7 = vld [vmem:[#allocation7] sm:$0xff]  ;;  %v104_v8 = vld [vmem:[#allocation7 + $0x8] sm:$0xff]  ;;  %v105_v9 = vld [vmem:[#allocation7 + $0x10] sm:$0xff]  ;;  %v372_v11 = vpack.c.bf16 %v188_v6, %v187_v4  ;;  %s297_s19 = sshll.u32 %s519_s17, 4  ;;  %s298_s19 = int_to_ptr.vmem [resolvable:$true] %s297_s19 }
  0x43   :  { %v106_v10 = vld [vmem:[#allocation7 + $0x18] sm:$0xff]  ;;  %v363_v12 = vpack.c.bf16 %v104_v8, %v103_v7  ;;  %s458_s20 = scalar_lea.vmem %s298_s19, 128  ;;  %p463_p3 = scmp.lt.s32.totalorder %s298_s19, %s298_s19 }
  0x44   :  { %370 = vmatpush3.bf16.msra.mxu1 %v369_v5  ;;  %v366_v13 = vpack.c.bf16 %v106_v10, %v105_v9  ;;  %v184_v14 = vld [vmem:[#allocation4] sm:$0xff]  ;;  %p459_p2 = scmp.ne.s32.totalorder %s298_s19, %s458_s20  ;;  %p464_p4 = scmp.lt.s32.totalorder %s458_s20, %s458_s20 }
  0x45   :  { %371 = vmatprep.subr.bf16.mxu1 %v516_v0  ;;  %364 = vmatpush3.bf16.msra.mxu0 %v363_v12  ;;  %v327_v15 = vld [vmem:[%s641_s4 + $0x1] ss:$0 sm:$0xff]  ;;  %v325_v17 = vld [vmem:[%s640_s3] ss:$0 sm:$0xff] }
  0x46   :  { %365 = vmatprep.subr.bf16.mxu0 %v516_v0  ;;  %p465_p5 = por %p464_p4, %p463_p3 }
  0x48   :  { %373 = vmatpush3.bf16.msra.mxu1 %v372_v11  ;;  %p466_p6 = pnand %p465_p5, %p459_p2 }
  0x49   :  { %367 = vmatpush3.bf16.msra.mxu0 %v366_v13 }
  0x4b   :  { %360 = vmatmul.mubr.msk.f32.vlgmr.msra.gmra.mrb[0].mxu1 %vm107_vm1, %v184_v14 }
  0x4c   :  { %349 = vmatmul.mubr.msk.f32.vlgmr.msra.gmra.mrb[0].mxu0 %vm107_vm1, %v184_v14 }
 0x11e   :  { %v258_v16 = vpop.f32.mrb[0].mxu1 }
 0x11f   :  { %v262_v18 = vadd.f32 %v327_v15, %v258_v16  ;;  %v361_v19 = vpop.f32.mrb[1].mxu1  ;;  %v177_v20 = vpop.f32.mrb[0].mxu0 }
 0x120   :  { %v181_v22 = vadd.f32 %v325_v17, %v177_v20  ;;  %v350_v23 = vpop.f32.mrb[1].mxu0 }
 0x121   :  { %v268_v21 = vadd.f32 0.37816456, %v262_v18 }
 0x122   :  { %289 = vst [vmem:[#allocation10] sm:$0xff] %v181_v22 }
 0x123   :  { %v272_v24 = vand.u32 2147483647, %v268_v21 }
 0x124   :  { %469 = shalt.err (!%p466_p6)
}
 0x125   :  { %s470_s21 = scalar_lea.hbm %s642_s5, 128 }
 0x126   :  { %p471_p7 = scmp.ne.s32.totalorder %s642_s5, %s470_s21  ;;  %p474_p8 = scmp.lt.u32.totalorder %s470_s21, %s642_s5 }
 0x128   :  { %p476_p9 = pnand %p474_p8, %p471_p7 }
 0x12a   :  { %479 = shalt.err (!%p476_p9)
}
 0x12b   :  { %300 = dma.vmem_to_hbm [thread:$0]  %s298_s19, 128, %s642_s5, [#allocation6]   ;;  %v273_v25 = vsub.f32 0.0, %v272_v24  ;;  %v269_v35 = vmax.f32 %v268_v21, 0.0  ;;  %vm270_vm3 = vcmp.ne.f32.partialorder %v268_v21, %v268_v21 }
 0x12c   :  { %s520_s1 = smov [#allocation11]  }
 0x12d   :  { %v274_v26 = vmul.f32 1.442695, %v273_v25  ;;  %s307_s22 = sshll.u32 %s520_s1, 4  ;;  %s308_s22 = int_to_ptr.vmem [resolvable:$true] %s307_s22 }
 0x12e   :  { %s480_s5 = scalar_lea.vmem %s308_s22, 128  ;;  %p485_p11 = scmp.lt.s32.totalorder %s308_s22, %s308_s22 }
 0x12f   :  { %385 = vpow2.f32 %v274_v26  ;;  %p481_p10 = scmp.ne.s32.totalorder %s308_s22, %s480_s5  ;;  %p486_p12 = scmp.lt.s32.totalorder %s480_s5, %s480_s5 }
 0x131   :  { %p487_p13 = por %p486_p12, %p485_p11 }
 0x133   :  { %p488_p0 = pnand %p487_p13, %p481_p10 }
 0x139   :  { %v386_v27 = vpop.eup %385 }
 0x13a   :  { %v276_v28 = vadd.f32 1.0, %v386_v27  ;;  %v279_v29 = vmul.f32 -0.5, %v386_v27  ;;  %v282_v31 = vand.u32 2147483647, %v386_v27 }
 0x13c   :  { %387 = vlog2.f32 %v276_v28  ;;  %v280_v30 = vadd.f32 1.0, %v279_v29  ;;  %vm283_vm2 = vcmp.lt.f32.partialorder %v282_v31, 0.0004427343 }
 0x13e   :  { %v281_v34 = vmul.f32 %v386_v27, %v280_v30 }
 0x146   :  { %v388_v32 = vpop.eup %387 }
 0x147   :  { %v278_v33 = vmul.f32 0.6931472, %v388_v32 }
 0x149   :  { %v284_v36 = vsel %vm283_vm2, %v281_v34, %v278_v33 }
 0x14a   :  { %v285_v37 = vadd.f32 %v284_v36, %v269_v35 }
 0x14c   :  { %v286_v38 = vsel %vm270_vm3, %v268_v21, %v285_v37 }
 0x14d   :  { %v287_v39 = vadd.f32 0.1, %v286_v38 }
 0x14f   :  { %290 = vst [vmem:[#allocation11] sm:$0xff] %v287_v39 }
 0x150   :  { %491 = shalt.err (!%p488_p0)
}
 0x151   :  { %s492_s7 = scalar_lea.hbm %s643_s6, 128 }
 0x152   :  { %p493_p1 = scmp.ne.s32.totalorder %s643_s6, %s492_s7  ;;  %p496_p2 = scmp.lt.u32.totalorder %s492_s7, %s643_s6 }
 0x154   :  { %p498_p3 = pnand %p496_p2, %p493_p1 }
 0x156   :  { %501 = shalt.err (!%p498_p3)
}
 0x157   :  { %310 = dma.vmem_to_hbm [thread:$0]  %s308_s22, 128, %s643_s6, [#allocation12]  }
 0x158   :  { %506 = dma.done.wait [#allocation6], 128  }
 0x159   :  { %507 = vsyncadd [#allocation6], 4294967168 }
 0x15a   :  { %508 = dma.done.wait [#allocation12], 128  }
 0x15b   :  { %509 = vsyncadd [#allocation12], 4294967168 }
 0x15c   :  { %317 = vsyncpa [#allocation5], 1 }
 0x15d   :  { %318 = vsyncpa [#allocation8], 1 }
 0x15e   :  { %319 = vsyncpa [#allocation6], 1 }
 0x15f   :  { %320 = vsyncpa [#allocation12], 1 }

</bundles_post_ra>
